<compile_context>
chip_gen: v5e
topology: v5e:2x2
jax: 0.10.0
libtpu: 0.0.40
codegen_flags: <defaults>
</compile_context>

<pallas_src>
import jax
import jax.numpy as jnp
from jax.experimental import pallas as pl
from jax.experimental.pallas import tpu as pltpu


def _round_up(x: int, m: int) -> int:
    return ((x + m - 1) // m) * m


def _latent_sampler_kernel(r_ref, w_ref, b_ref, eps_ref, out_ref):
    z_pad = eps_ref.shape[-1]

    # In-kernel bf16 cast (cheap VPU op hidden under MXU/store work).
    r = r_ref[...].astype(jnp.bfloat16)

    # Single fused MXU pass: [tb, r_dim](bf16) @ [r_dim, 2*z_pad](bf16) -> f32 acc.
    acc = jnp.dot(r, w_ref[...], preferred_element_type=jnp.float32)
    acc = acc + b_ref[...]                      # f32 bias, broadcast over sublanes

    mu = acc[:, :z_pad]                         # static split at a 128-lane boundary
    log_sigma = acc[:, z_pad:]

    # sigma = 1e-4 + softplus(log_sigma); numerically stable, all f32 (EUP exp/log1p).
    sp = jnp.maximum(log_sigma, 0.0) + jnp.log1p(jnp.exp(-jnp.abs(log_sigma)))
    sigma = 0.0001 + sp

    z = mu + sigma * eps_ref[...]

    # One fused, lane-dense output slab [tb, 3*z_pad] = [z || mu || sigma]:
    # a single wide store stream instead of three separate output pipelines.
    out_ref[...] = jnp.concatenate([z, mu, sigma], axis=-1).astype(out_ref.dtype)


def latent_sampler_pallas(r, w_fused, b_fused, eps, *, tile_b=512,
                          out_dtype=jnp.float32):
    """r: [B, r_dim] f32; w_fused: [r_dim, 2*z_pad] bf16; b_fused: [1, 2*z_pad] f32;
    eps: [B, z_pad] f32.  Returns fused [B, 3*z_pad] slab = [z || mu || sigma]."""
    B, r_dim = r.shape
    two_zp = w_fused.shape[1]
    z_pad = two_zp // 2

    # Tile over B: multiple of 16 (sublane packing of the bf16-cast r); cap the tile
    # so the parallel grid has >= 2 steps when possible (2-TC sharding on v7x).
    b_half = _round_up(max((B + 1) // 2, 1), 16)
    tb = min(_round_up(max(tile_b, 16), 16), b_half)
    B_pad = _round_up(B, tb)
    if B_pad != B:
        r = jnp.pad(r, ((0, B_pad - B), (0, 0)))
        eps = jnp.pad(eps, ((0, B_pad - B), (0, 0)))
    grid = (B_pad // tb,)

    out_itemsize = jnp.dtype(out_dtype).itemsize
    cost = pl.CostEstimate(
        flops=2 * B_pad * r_dim * two_zp,
        transcendentals=2 * B_pad * z_pad,            # exp + log1p (softplus)
        bytes_accessed=(B_pad * r_dim * 4             # r (f32)
                        + r_dim * two_zp * 2          # fused weight (bf16)
                        + two_zp * 4                  # fused bias (f32)
                        + B_pad * z_pad * 4           # eps (f32)
                        + B_pad * 3 * z_pad * out_itemsize),  # fused output slab
    )

    out = pl.pallas_call(
        _latent_sampler_kernel,
        out_shape=jax.ShapeDtypeStruct((B_pad, 3 * z_pad), out_dtype),
        grid_spec=pltpu.PrefetchScalarGridSpec(
            num_scalar_prefetch=0,
            grid=grid,
            in_specs=[
                pl.BlockSpec((tb, r_dim), lambda i: (i, 0)),      # r tile (f32)
                pl.BlockSpec((r_dim, two_zp), lambda i: (0, 0)),  # weights: VMEM-resident
                pl.BlockSpec((1, two_zp), lambda i: (0, 0)),      # bias:    VMEM-resident
                pl.BlockSpec((tb, z_pad), lambda i: (i, 0)),      # eps tile (f32)
            ],
            out_specs=pl.BlockSpec((tb, 3 * z_pad), lambda i: (i, 0)),
        ),
        compiler_params=pltpu.CompilerParams(dimension_semantics=("parallel",)),
        cost_estimate=cost,
    )(r, w_fused, b_fused, eps)

    return out[:B]


def prepare_fused_params(params):
    """Fuse the two linears into one [r_dim, 2*z_pad] bf16 weight + [1, 2*z_pad] f32 bias.
    Each half is padded to a 128-lane multiple so the in-kernel split stays aligned."""
    r_dim, z_dim = params["wm"].shape
    z_pad = _round_up(z_dim, 128)
    wm, wl = params["wm"], params["wl"]
    bm, bl = params["bm"], params["bl"]
    if z_pad != z_dim:
        wm = jnp.pad(wm, ((0, 0), (0, z_pad - z_dim)))
        wl = jnp.pad(wl, ((0, 0), (0, z_pad - z_dim)))
        bm = jnp.pad(bm, (0, z_pad - z_dim))
        bl = jnp.pad(bl, (0, z_pad - z_dim))
    w_fused = jnp.concatenate([wm, wl], axis=1).astype(jnp.bfloat16)
    b_fused = jnp.concatenate([bm, bl]).reshape(1, 2 * z_pad).astype(jnp.float32)
    return w_fused, b_fused, z_dim, z_pad


def latent_sampler(r, params, key, *, tile_b=512, out_dtype=jnp.float32):
    """Matches the PyTorch module: accepts [r_dim] or [B, r_dim]; returns (z, mu, sigma)."""
    squeeze = (r.ndim == 1)
    if squeeze:
        r = r[None, :]
    B = r.shape[0]

    w_fused, b_fused, z_dim, z_pad = prepare_fused_params(params)

    # eps ~ N(0, 1), same role as torch.randn_like(sigma).
    eps = jax.random.normal(key, (B, z_dim), dtype=jnp.float32)
    if z_pad != z_dim:
        eps = jnp.pad(eps, ((0, 0), (0, z_pad - z_dim)))

    out = latent_sampler_pallas(r.astype(jnp.float32), w_fused, b_fused, eps,
                                tile_b=tile_b, out_dtype=out_dtype)
    z = out[:, :z_dim]
    mu = out[:, z_pad:z_pad + z_dim]
    sigma = out[:, 2 * z_pad:2 * z_pad + z_dim]
    if squeeze:
        z, mu, sigma = z[0], mu[0], sigma[0]
    return z, mu, sigma


def init_params(key, r_dim, z_dim):
    """torch.nn.Linear-style init (uniform ±1/sqrt(fan_in)); weights stored as [r_dim, z_dim]."""
    k1, k2, k3, k4 = jax.random.split(key, 4)
    bound = 1.0 / jnp.sqrt(r_dim)
    return {
        "wm": jax.random.uniform(k1, (r_dim, z_dim), jnp.float32, -bound, bound),
        "bm": jax.random.uniform(k2, (z_dim,), jnp.float32, -bound, bound),
        "wl": jax.random.uniform(k3, (r_dim, z_dim), jnp.float32, -bound, bound),
        "bl": jax.random.uniform(k4, (z_dim,), jnp.float32, -bound, bound),
    }


if __name__ == "__main__":
    r_dim, z_dim, B = 32, 128, 200            # B not a tile multiple -> exercises padding
    root = jax.random.PRNGKey(0)
    k_param, k_r, k_eps = jax.random.split(root, 3)

    params = init_params(k_param, r_dim, z_dim)
    r = jax.random.normal(k_r, (B, r_dim), dtype=jnp.float32)

    z, mu, sigma = latent_sampler(r, params, k_eps, tile_b=512)   # grid of 2 tiles
    jax.block_until_ready((z, mu, sigma))
    assert z.shape == (B, z_dim) and mu.shape == (B, z_dim) and sigma.shape == (B, z_dim)

    # Reference with the same bf16-rounded matmul inputs (f32 accumulation) and same eps.
    eps = jax.random.normal(k_eps, (B, z_dim), dtype=jnp.float32)
    r_b = r.astype(jnp.bfloat16).astype(jnp.float32)
    wm_b = params["wm"].astype(jnp.bfloat16).astype(jnp.float32)
    wl_b = params["wl"].astype(jnp.bfloat16).astype(jnp.float32)
    mu_ref = r_b @ wm_b + params["bm"]
    sigma_ref = 0.0001 + jax.nn.softplus(r_b @ wl_b + params["bl"])
    z_ref = mu_ref + sigma_ref * eps
    assert jnp.allclose(mu, mu_ref, atol=1e-3, rtol=1e-3)
    assert jnp.allclose(sigma, sigma_ref, atol=1e-3, rtol=1e-3)
    assert jnp.allclose(z, z_ref, atol=2e-3, rtol=2e-3)

    # Full-f32 module reference (bf16 MXU inputs -> looser tolerance).
    mu_f32 = r @ params["wm"] + params["bm"]
    sigma_f32 = 0.0001 + jax.nn.softplus(r @ params["wl"] + params["bl"])
    assert jnp.allclose(mu, mu_f32, atol=5e-2, rtol=5e-2)
    assert jnp.allclose(sigma, sigma_f32, atol=5e-2, rtol=5e-2)
    assert jnp.all(jnp.isfinite(z))

    # Single-sample ([r_dim]) path, as in the PyTorch docstring.
    z1, mu1, s1 = latent_sampler(r[0], params, jax.random.PRNGKey(7))
    jax.block_until_ready((z1, mu1, s1))
    assert z1.shape == (z_dim,) and mu1.shape == (z_dim,) and s1.shape == (z_dim,)
    assert jnp.allclose(mu1, mu_ref[0], atol=1e-3, rtol=1e-3)

    print("KERNEL_OK")
</pallas_src>

<mosaic_0001>
module attributes {stable_mosaic.version = 11 : i64} {
  func.func @_latent_sampler_kernel(%arg0: i32, %arg1: memref<112x32xf32, #tpu.memory_space<vmem>>, %arg2: memref<32x256xbf16, #tpu.memory_space<vmem>>, %arg3: memref<1x256xf32, #tpu.memory_space<vmem>>, %arg4: memref<112x128xf32, #tpu.memory_space<vmem>>, %arg5: memref<112x384xf32, #tpu.memory_space<vmem>>) attributes {dimension_semantics = [#tpu.dimension_semantics<parallel>], iteration_bounds = array<i64: 2>, scalar_prefetch = 0 : i64, scratch_operands = 0 : i64, tpu.core_type = #tpu.core_type<tc>, window_params = [{transform_indices = @transform_0, window_bounds = array<i64: 112, 32>}, {pipeline_mode = #tpu.pipeline_mode<synchronous>, transform_indices = @transform_1, window_bounds = array<i64: 32, 256>}, {pipeline_mode = #tpu.pipeline_mode<synchronous>, transform_indices = @transform_2, window_bounds = array<i64: 1, 256>}, {transform_indices = @transform_3, window_bounds = array<i64: 112, 128>}, {transform_indices = @transform_4, window_bounds = array<i64: 112, 384>}]} {
    %c0 = arith.constant 0 : index
    %c0_0 = arith.constant 0 : index
    %0 = vector.load %arg1[%c0, %c0_0] : memref<112x32xf32, #tpu.memory_space<vmem>>, vector<112x32xf32>
    %1 = arith.truncf %0 : vector<112x32xf32> to vector<112x32xbf16>
    %c0_1 = arith.constant 0 : index
    %c0_2 = arith.constant 0 : index
    %2 = vector.load %arg2[%c0_1, %c0_2] : memref<32x256xbf16, #tpu.memory_space<vmem>>, vector<32x256xbf16>
    %cst = arith.constant dense<0.000000e+00> : vector<112x256xf32>
    %3 = tpu.matmul %1, %2, %cst {dimension_numbers = #tpu.dot_dimension_numbers<[1], [0], [0], [1], [0, 0, 1, 1], [], []>} : vector<112x32xbf16>, vector<32x256xbf16>, vector<112x256xf32> -> vector<112x256xf32>
    %c0_3 = arith.constant 0 : index
    %c0_4 = arith.constant 0 : index
    %4 = vector.load %arg3[%c0_3, %c0_4] : memref<1x256xf32, #tpu.memory_space<vmem>>, vector<1x256xf32>
    %5 = vector.broadcast %4 : vector<1x256xf32> to vector<112x256xf32>
    %6 = arith.addf %3, %5 : vector<112x256xf32>
    %7 = vector.extract_strided_slice %6 {offsets = [0, 0], sizes = [112, 128], strides = [1, 1]} : vector<112x256xf32> to vector<112x128xf32>
    %8 = vector.extract_strided_slice %6 {offsets = [0, 128], sizes = [112, 128], strides = [1, 1]} : vector<112x256xf32> to vector<112x128xf32>
    %cst_5 = arith.constant 0.000000e+00 : f32
    %9 = vector.broadcast %cst_5 : f32 to vector<112x128xf32>
    %10 = arith.maximumf %8, %9 : vector<112x128xf32>
    %11 = math.absf %8 : vector<112x128xf32>
    %cst_6 = arith.constant 0.000000e+00 : f32
    %12 = vector.broadcast %cst_6 : f32 to vector<112x128xf32>
    %13 = arith.subf %12, %11 : vector<112x128xf32>
    %14 = math.exp %13 : vector<112x128xf32>
    %15 = math.log1p %14 : vector<112x128xf32>
    %16 = arith.addf %10, %15 : vector<112x128xf32>
    %cst_7 = arith.constant 9.99999974E-5 : f32
    %17 = vector.broadcast %cst_7 : f32 to vector<112x128xf32>
    %18 = arith.addf %17, %16 : vector<112x128xf32>
    %c0_8 = arith.constant 0 : index
    %c0_9 = arith.constant 0 : index
    %19 = vector.load %arg4[%c0_8, %c0_9] : memref<112x128xf32, #tpu.memory_space<vmem>>, vector<112x128xf32>
    %20 = arith.mulf %18, %19 : vector<112x128xf32>
    %21 = arith.addf %7, %20 : vector<112x128xf32>
    %22 = tpu.concatenate %21, %7, %18 in 1 : vector<112x128xf32>, vector<112x128xf32>, vector<112x128xf32> -> vector<112x384xf32>
    %c0_10 = arith.constant 0 : index
    %c0_11 = arith.constant 0 : index
    %23 = vector.load %arg5[%c0_10, %c0_11] : memref<112x384xf32, #tpu.memory_space<vmem>>, vector<112x384xf32>
    tpu.vector_store %arg5[%c0_10, %c0_11], %22 {strides = array<i32>} : memref<112x384xf32, #tpu.memory_space<vmem>>, vector<112x384xf32>,
    return
  }
  func.func @transform_0(%arg0: i32) -> (i32, i32) {
    %c0_i32 = arith.constant 0 : i32
    %c0_i32_0 = arith.constant 0 : i32
    return %arg0, %c0_i32 : i32, i32
  }
  func.func @transform_1(%arg0: i32) -> (i32, i32) {
    %c0_i32 = arith.constant 0 : i32
    %c0_i32_0 = arith.constant 0 : i32
    %c0_i32_1 = arith.constant 0 : i32
    return %c0_i32, %c0_i32_0 : i32, i32
  }
  func.func @transform_2(%arg0: i32) -> (i32, i32) {
    %c0_i32 = arith.constant 0 : i32
    %c0_i32_0 = arith.constant 0 : i32
    %c0_i32_1 = arith.constant 0 : i32
    return %c0_i32, %c0_i32_0 : i32, i32
  }
  func.func @transform_3(%arg0: i32) -> (i32, i32) {
    %c0_i32 = arith.constant 0 : i32
    %c0_i32_0 = arith.constant 0 : i32
    return %arg0, %c0_i32 : i32, i32
  }
  func.func @transform_4(%arg0: i32) -> (i32, i32) {
    %c0_i32 = arith.constant 0 : i32
    %c0_i32_0 = arith.constant 0 : i32
    return %arg0, %c0_i32 : i32, i32
  }
}

</mosaic_0001>

<bundles_post_ra>
// kernel: tpu_custom_call.1
= control target key start
LH: loop header
LB: loop body
LE: loop exit
PB: predicated region body
PF: predicated region fallthrough
CT: control target
= control target key end

     0   :  { %9 = vsyncpa [#allocation3], 0  ;;  %s1420_s0 = inlined_call_operand.vmem [shape: f32[224,32], index: 0, kind: input, shape index: {}]   ;;  %s1421_s1 = inlined_call_operand.vmem [shape: bf16[32,256], index: 1, kind: input, shape index: {}]   ;;  %s1422_s2 = inlined_call_operand.vmem [shape: f32[1,256], index: 2, kind: input, shape index: {}]   ;;  %s1423_s3 = inlined_call_operand.vmem [shape: f32[224,128], index: 3, kind: input, shape index: {}]   ;;  %s1424_s4 = inlined_call_operand.hbm [shape: f32[224,384], index: 4, kind: output, shape index: {}]  }
   0x1   :  { %11 = vsyncpa [#allocation3 + $0x1], 0  ;;  %s1020_s15 = smov 0   ;;  %s1022_s16 = smov 0  }
   0x2   :  { %s1024_s17 = smov 0   ;;  %s1026_s18 = smov 0  }
   0x3 LB: > { %s1041_s19 = sadd.s32 4294967295, %s991_s18   ;;  %s782_s20 = sadd.s32 4294967294, %s991_s18   ;;  %s991_s18 = sphi %s1026_s18, %s1444_s18   ;;  %s987_s17 = sphi %s1024_s17, %s1443_s17   ;;  %s983_s16 = sphi %s1022_s16, %s1442_s16   ;;  %s979_s15 = sphi %s1020_s15, %s1441_s15  }
   0x4   : > { %s1045_s21 = sadd.s32 1, %s991_s18   ;;  %s118_s22 = sadd.s32 1, %s987_s17 }
   0x5   : > { %s115_s23 = ssub.s32 %s991_s18, %s1045_s21  ;;  %p128_p0 = scmp.ne.s32.totalorder %s987_s17, %s983_s16 }
   0x6   : > { %p116_p1 = scmp.eq.s32.totalorder %s115_s23, 0  ;;  %p129_p2 = scmp.eq.s32.totalorder %s1041_s19, 1 }
   0x7   : > { %p134_p3 = scmp.ne.s32.totalorder %s983_s16, %s979_s15  ;;  %p135_p4 = scmp.eq.s32.totalorder %s782_s20, 1 }
   0x8   : > { %s1056_s24 = scalar_select %p116_p1, %s987_s17, %s118_s22  }
   0x9   : > { %p1058_p5 = por %p129_p2, %p128_p0  ;;  %p1062_p6 = por %p135_p4, %p134_p3 }
   0xa   : > { %p785_p7 = scmp.ge.s32.totalorder %s991_s18, 1  ;;  %p177_p8 = scmp.lt.s32.totalorder %s991_s18, 3 }
   0xc   : > { %p178_p9 = pnand %p785_p7, %p177_p8 }
   0xd   : > { %s208_s9 = smul.u32 (!%p178_p9), 14, %s1041_s19  ;;  %s205_s7 = sand.u32 (!%p178_p9), 1, %s983_s16  }
   0xe   : > { %181 = sbr.rel (%p178_p9) target bundleno = 260 (0x104), region = 36  ;;  %s949_s6 = scalar_lea.hbm (!%p178_p9), %s1424_s4, 672 }
   0xf   : > { %p209_p10 = scmp.lt.s32.totalorder (!%p178_p9), %s208_s9, 27  ;;  %s829_s8 = smul.u32 (!%p178_p9), 336, %s205_s7 }
  0x11   : > { %s1154_s10 = scalar_lea.vmem (!%p178_p9), [#allocation2], %s829_s8 }
  0x13   : > { %v823_v0 = vld [vmem:[%s1421_s1 + $0x14] sm:$0xf]  ;;  %v800_v1 = vld [vmem:[%s1421_s1 + $0x18] sm:$0xf0]  ;;  %v821_v2 = vld [vmem:[%s1421_s1 + $0x4] sm:$0xf] }
  0x14   : > { %v803_v3 = vor.u32 %v823_v0, %v800_v1  ;;  %v792_v4 = vld [vmem:[%s1421_s1 + $0x8] sm:$0xf0]  ;;  %v798_v5 = vld [vmem:[%s1421_s1 + $0x10] sm:$0xf]  ;;  %v824_v6 = vld [vmem:[%s1421_s1 + $0x14] sm:$0xf0] }
  0x15   : > { %v790_v7 = vld [vmem:[%s1421_s1] sm:$0xf]  ;;  %v822_v8 = vld [vmem:[%s1421_s1 + $0x4] sm:$0xf0]  ;;  %v795_v9 = vor.u32 %v821_v2, %v792_v4  ;;  %v799_v10 = vor.u32 %v824_v6, %v798_v5  ;;  %s1446_s9 = smov (!%p209_p10, %s208_s9), 27  ;;  %vm273_vm0 = vcmask 261120  }
  0x16   : > { %345 = vmatpush.bf16.msra.mxu1 %v803_v3  ;;  %827 = vmatpush.bf16.msra.mxu3 %v803_v3  ;;  %v791_v11 = vor.u32 %v822_v8, %v790_v7  ;;  %s786_s27 = sshll.u32 %s1446_s9, 3  ;;  %v247_v33 = vld [vmem:[%s1422_s2] sm:$0x3]  ;;  %s837_s9 = smul.u32 336, %s1041_s19 }
  0x17   : > { %301 = vmatpush.bf16.msra.mxu0 %v799_v10  ;;  %825 = vmatpush.bf16.msra.mxu2 %v799_v10  ;;  %s1101_s30 = scalar_lea.vmem %s1420_s0, %s786_s27  ;;  %v1134_v34 = vperm.slane %v247_v33, 1  ;;  %v1143_v40 = vperm.slane %v247_v33, 0  ;;  %s1187_s13 = scalar_lea.vmem %s1423_s3, %s786_s27 }
  0x18   : > { %v222_v12 = vld [vmem:[%s1101_s30] sm:$0xff]  ;;  %v223_v13 = vld [vmem:[%s1101_s30 + $0x8] sm:$0xff]  ;;  %v224_v18 = vld [vmem:[%s1101_s30 + $0x10] sm:$0xff]  ;;  %s704_s22 = scalar_lea.hbm %s1424_s4, %s837_s9  ;;  %s705_s19 = sshll.u32 %s1154_s10, 4  ;;  %s706_s19 = int_to_ptr.vmem [resolvable:$true] %s705_s19 }
  0x19   : > { %v230_v14 = vld [vmem:[%s1101_s30 + $0x40] sm:$0xff]  ;;  %v236_v15 = vpack.c.bf16 %v223_v13, %v222_v12  ;;  %v231_v16 = vld [vmem:[%s1101_s30 + $0x48] sm:$0xff]  ;;  %v225_v19 = vld [vmem:[%s1101_s30 + $0x18] sm:$0xff]  ;;  %s707_s23 = sshll.u32 %s704_s22, 4  ;;  %s692_s27 = scalar_lea.sflag [#allocation3], %s205_s7  ;;  %s708_s23 = int_to_ptr.hbm [resolvable:$true] %s707_s23 }
  0x1a   : > { %346 = vmatpush.bf16.msra.mxu1 %v795_v9  ;;  %828 = vmatpush.bf16.msra.mxu3 %v795_v9  ;;  %v240_v17 = vpack.c.bf16 %v231_v16, %v230_v14  ;;  %v232_v20 = vld [vmem:[%s1101_s30 + $0x50] sm:$0xff]  ;;  %v233_v21 = vld [vmem:[%s1101_s30 + $0x58] sm:$0xff]  ;;  %v237_v22 = vpack.c.bf16 %v225_v19, %v224_v18  ;;  %v226_v24 = vld [vmem:[%s1101_s30 + $0x20] sm:$0xff]  ;;  %s943_s28 = sshra.s32 %s708_s23, 4  ;;  %s944_s28 = int_to_ptr.hbm [resolvable:$true] %s943_s28 }
  0x1b   : > { %302 = vmatpush.bf16.msra.mxu0 %v791_v11  ;;  %826 = vmatpush.bf16.msra.mxu2 %v791_v11  ;;  %v241_v23 = vpack.c.bf16 %v233_v21, %v232_v20  ;;  %v227_v25 = vld [vmem:[%s1101_s30 + $0x28] sm:$0xff]  ;;  %v234_v26 = vld [vmem:[%s1101_s30 + $0x60] sm:$0xff]  ;;  %v228_v30 = vld [vmem:[%s1101_s30 + $0x30] sm:$0xff]  ;;  %s945_s29 = scalar_lea.hbm %s944_s28, 336  ;;  %p950_p0 = scmp.lt.s32.totalorder %s944_s28, %s1424_s4 }
  0x1c   : > { %v235_v27 = vld [vmem:[%s1101_s30 + $0x68] sm:$0xff]  ;;  %v238_v28 = vpack.c.bf16 %v227_v25, %v226_v24  ;;  %v229_v31 = vld [vmem:[%s1101_s30 + $0x38] sm:$0xff]  ;;  %p946_p11 = scmp.ne.s32.totalorder %s944_s28, %s945_s29  ;;  %p951_p1 = scmp.lt.s32.totalorder %s949_s6, %s945_s29 }
  0x1d   : > { %811 = vmatmul.msk.bf16.vlgmr.msra.gmra.mxu1 %vm273_vm0, %v236_v15  ;;  %815 = vmatmul.msk.bf16.vlgmr.msra.gmra.mxu3 %vm273_vm0, %v240_v17  ;;  %v242_v29 = vpack.c.bf16 %v235_v27, %v234_v26  ;;  %v239_v32 = vpack.c.bf16 %v229_v31, %v228_v30 }
  0x1e   : > { %804 = vmatmul.msk.bf16.vlgmr.msra.gmra.mxu0 %vm273_vm0, %v236_v15  ;;  %808 = vmatmul.msk.bf16.vlgmr.msra.gmra.mxu2 %vm273_vm0, %v240_v17  ;;  %p947_p12 = pnand %p946_p11, %p1058_p5  ;;  %p952_p2 = por %p951_p1, %p950_p0 }
  0x20   : > { %p948_p13 = pneg %p947_p12 }
  0x22   : > { %p953_p3 = pnand %p952_p2, %p948_p13 }
  0x2d   : > { %812 = vmatmul.msk.bf16.gmra.mxu1 %vm273_vm0, %v237_v22  ;;  %816 = vmatmul.msk.bf16.gmra.mxu3 %vm273_vm0, %v241_v23 }
  0x2e   : > { %805 = vmatmul.msk.bf16.gmra.mxu0 %vm273_vm0, %v237_v22  ;;  %809 = vmatmul.msk.bf16.gmra.mxu2 %vm273_vm0, %v241_v23 }
  0x3d   : > { %813 = vmatmul.msk.bf16.gmra.mxu1 %vm273_vm0, %v238_v28  ;;  %817 = vmatmul.msk.bf16.gmra.mxu3 %vm273_vm0, %v242_v29 }
  0x3e   : > { %806 = vmatmul.msk.bf16.gmra.mxu0 %vm273_vm0, %v238_v28  ;;  %810 = vmatmul.msk.bf16.gmra.mxu2 %vm273_vm0, %v242_v29 }
  0x4d   : > { %814 = vmatmul.msk.bf16.gmra.mxu1 %vm273_vm0, %v239_v32 }
  0x4e   : > { %807 = vmatmul.msk.bf16.gmra.mxu0 %vm273_vm0, %v239_v32 }
  0x9a   : > { %v348_v35 = vpop.f32.mrf.mxu1 }
  0x9b   : > { %v304_v36 = vpop.f32.mrf.mxu0  ;;  %v1138_v37 = vadd.f32 %v348_v35, %v1134_v34 }
  0x9c   : > { %v1146_v43 = vadd.f32 %v304_v36, %v1143_v40 }
  0x9d   : > { %v397_v38 = vand.u32 2147483647, %v1138_v37  ;;  %v383_v19 = vmax.f32 %v1138_v37, 0.0 }
  0x9e   : > { %650 = vst [vmem:[%s1154_s10 + $0x8] sm:$0xff] %v1146_v43 }
  0x9f   : > { %v411_v39 = vsub.f32 0.0, %v397_v38 }
  0xa0   : > { %v368_v42 = vpop.f32.mrf.mxu3 }
  0xa1   : > { %v425_v41 = vmul.f32 1.442695, %v411_v39  ;;  %v1149_v44 = vadd.f32 %v368_v42, %v1134_v34  ;;  %v324_v59 = vpop.f32.mrf.mxu2  ;;  %v607_v39 = vld [vmem:[%s1187_s13] sm:$0xff] }
  0xa2   : > { %v350_v45 = vpop.f32.mrf.mxu1  ;;  %v1172_v63 = vadd.f32 %v324_v59, %v1143_v40 }
  0xa3   : > { %873 = vpow2.f32 %v425_v41  ;;  %v1152_v46 = vadd.f32 %v350_v45, %v1134_v34  ;;  %v306_v47 = vpop.f32.mrf.mxu0  ;;  %v405_v48 = vand.u32 2147483647, %v1149_v44  ;;  %v391_v36 = vmax.f32 %v1149_v44, 0.0 }
  0xa4   : > { %v1160_v49 = vadd.f32 %v306_v47, %v1143_v40  ;;  %674 = vst [vmem:[%s1154_s10 + $0xc8] sm:$0xff] %v1172_v63 }
  0xa5   : > { %v398_v50 = vand.u32 2147483647, %v1152_v46  ;;  %v419_v51 = vsub.f32 0.0, %v405_v48  ;;  %v384_v38 = vmax.f32 %v1152_v46, 0.0 }
  0xa6   : > { %653 = vst [vmem:[%s1154_s10 + $0x20] sm:$0xff] %v1160_v49 }
  0xa7   : > { %v412_v52 = vsub.f32 0.0, %v398_v50  ;;  %v441_v53 = vmul.f32 1.442695, %v419_v51 }
  0xa8   : > { %v370_v56 = vpop.f32.mrf.mxu3 }
  0xa9   : > { %v874_v54 = vpop.eup %873  ;;  %v427_v55 = vmul.f32 1.442695, %v412_v52  ;;  %875 = vpow2.f32 %v441_v53  ;;  %v1166_v61 = vadd.f32 %v370_v56, %v1134_v34  ;;  %v326_v18 = vpop.f32.mrf.mxu2 }
  0xaa   : > { %v453_v57 = vadd.f32 1.0, %v874_v54  ;;  %v353_v58 = vpop.f32.mrf.mxu1  ;;  %v456_v60 = vmul.f32 -0.5, %v874_v54  ;;  %v459_v7 = vand.u32 2147483647, %v874_v54 }
  0xab   : > { %877 = vpow2.f32 %v427_v55  ;;  %v1169_v62 = vadd.f32 %v353_v58, %v1134_v34  ;;  %v309_v0 = vpop.f32.mrf.mxu0  ;;  %v406_v1 = vand.u32 2147483647, %v1166_v61 }
  0xac   : > { %879 = vlog2.f32 %v453_v57  ;;  %v457_v3 = vadd.f32 1.0, %v456_v60  ;;  %vm460_vm1 = vcmp.lt.f32.partialorder %v459_v7, 0.0004427343  ;;  %v1195_v33 = vadd.f32 %v309_v0, %v1143_v40 }
  0xad   : > { %v399_v2 = vand.u32 2147483647, %v1169_v62  ;;  %v420_v4 = vsub.f32 0.0, %v406_v1 }
  0xae   : > { %v458_v21 = vmul.f32 %v874_v54, %v457_v3  ;;  %656 = vst [vmem:[%s1154_s10 + $0x38] sm:$0xff] %v1195_v33  ;;  %v1215_v54 = vadd.f32 %v326_v18, %v1143_v40 }
  0xaf   : > { %v413_v5 = vsub.f32 0.0, %v399_v2  ;;  %v876_v6 = vpop.eup %875  ;;  %v443_v11 = vmul.f32 1.442695, %v420_v4 }
  0xb0   : > { %v525_v9 = vadd.f32 1.0, %v876_v6  ;;  %v528_v10 = vmul.f32 -0.5, %v876_v6  ;;  %v373_v12 = vpop.f32.mrf.mxu3  ;;  %v531_v25 = vand.u32 2147483647, %v876_v6  ;;  %677 = vst [vmem:[%s1154_s10 + $0xe0] sm:$0xff] %v1215_v54 }
  0xb1   : > { %v878_v8 = vpop.eup %877  ;;  %v429_v16 = vmul.f32 1.442695, %v413_v5  ;;  %v1180_v23 = vadd.f32 %v373_v12, %v1134_v34  ;;  %v329_v55 = vpop.f32.mrf.mxu2 }
  0xb2   : > { %v880_v13 = vpop.eup %879  ;;  %v462_v14 = vadd.f32 1.0, %v878_v8  ;;  %v465_v15 = vmul.f32 -0.5, %v878_v8  ;;  %v355_v17 = vpop.f32.mrf.mxu1  ;;  %881 = vlog2.f32 %v525_v9  ;;  %v529_v22 = vadd.f32 1.0, %v528_v10 }
  0xb3   : > { %v455_v20 = vmul.f32 0.6931472, %v880_v13  ;;  %v1190_v26 = vadd.f32 %v355_v17, %v1134_v34  ;;  %v468_v29 = vand.u32 2147483647, %v878_v8  ;;  %v311_v30 = vpop.f32.mrf.mxu0  ;;  %v407_v31 = vand.u32 2147483647, %v1180_v23 }
  0xb4   : > { %883 = vlog2.f32 %v462_v14  ;;  %v466_v28 = vadd.f32 1.0, %v465_v15  ;;  %v530_v37 = vmul.f32 %v876_v6, %v529_v22  ;;  %vm1200_vm2 = vcmp.lt.f32.partialorder %v531_v25, 0.0004427343  ;;  %v608_v15 = vld [vmem:[%s1187_s13 + $0x8] sm:$0xff] }
  0xb5   : > { %v461_v24 = vsel %vm460_vm1, %v458_v21, %v455_v20  ;;  %885 = vpow2.f32 %v443_v11  ;;  %v400_v32 = vand.u32 2147483647, %v1190_v26  ;;  %v421_v45 = vsub.f32 0.0, %v407_v31 }
  0xb6   : > { %v579_v27 = vadd.f32 %v461_v24, %v383_v19  ;;  %887 = vpow2.f32 %v429_v16  ;;  %v1207_v50 = vadd.f32 %v311_v30, %v1143_v40  ;;  %v467_v52 = vmul.f32 %v878_v8, %v466_v28  ;;  %v615_v19 = vld [vmem:[%s1187_s13 + $0x40] sm:$0xff] }
  0xb7   : > { %v414_v47 = vsub.f32 0.0, %v400_v32  ;;  %vm1210_vm3 = vcmp.lt.f32.partialorder %v468_v29, 0.0004427343  ;;  %v445_v58 = vmul.f32 1.442695, %v421_v45  ;;  %v392_v20 = vmax.f32 %v1166_v61, 0.0 }
  0xb8   : > { %v593_v35 = vadd.f32 0.0001, %v579_v27  ;;  %v882_v41 = vpop.eup %881  ;;  %v375_v48 = vpop.f32.mrf.mxu3  ;;  %659 = vst [vmem:[%s1154_s10 + $0x50] sm:$0xff] %v1207_v50  ;;  %v385_v25 = vmax.f32 %v1169_v62, 0.0  ;;  %v1249_v32 = vadd.f32 %v329_v55, %v1143_v40 }
  0xb9   : > { %v527_v44 = vmul.f32 0.6931472, %v882_v41  ;;  %v431_v60 = vmul.f32 1.442695, %v414_v47  ;;  %v1226_v10 = vadd.f32 %v375_v48, %v1134_v34 }
  0xba   : > { %v884_v51 = vpop.eup %883  ;;  %651 = vst [vmem:[%s1154_s10 + $0x10] sm:$0xff] %v593_v35  ;;  %v358_v53 = vpop.f32.mrf.mxu1  ;;  %v621_v59 = vmul.f32 %v607_v39, %v593_v35 }
  0xbb   : > { %v886_v56 = vpop.eup %885  ;;  %v464_v57 = vmul.f32 0.6931472, %v884_v51  ;;  %v533_v1 = vsel %vm1200_vm2, %v530_v37, %v527_v44  ;;  %v1229_v11 = vadd.f32 %v358_v53, %v1134_v34  ;;  %v314_v24 = vpop.f32.mrf.mxu0  ;;  %v408_v27 = vand.u32 2147483647, %v1226_v10  ;;  %680 = vst [vmem:[%s1154_s10 + $0xf8] sm:$0xff] %v1249_v32 }
  0xbc   : > { %v888_v0 = vpop.eup %887  ;;  %v534_v2 = vadd.f32 1.0, %v886_v56  ;;  %v537_v3 = vmul.f32 -0.5, %v886_v56  ;;  %v540_v4 = vand.u32 2147483647, %v886_v56  ;;  %v587_v5 = vadd.f32 %v533_v1, %v391_v36  ;;  %v331_v35 = vpop.f32.mrf.mxu2 }
  0xbd   : > { %v470_v6 = vsel %vm1210_vm3, %v467_v52, %v464_v57  ;;  %v471_v7 = vadd.f32 1.0, %v888_v0  ;;  %v474_v8 = vmul.f32 -0.5, %v888_v0  ;;  %v477_v17 = vand.u32 2147483647, %v888_v0 }
  0xbe   : > { %v580_v9 = vadd.f32 %v470_v6, %v384_v38  ;;  %889 = vlog2.f32 %v534_v2  ;;  %v601_v12 = vadd.f32 0.0001, %v587_v5  ;;  %v538_v13 = vadd.f32 1.0, %v537_v3 }
  0xbf   : > { %891 = vlog2.f32 %v471_v7  ;;  %v475_v14 = vadd.f32 1.0, %v474_v8  ;;  %v635_v18 = vadd.f32 %v621_v59, %v1146_v43  ;;  %vm1236_vm4 = vcmp.lt.f32.partialorder %v540_v4, 0.0004427343  ;;  %v616_v4 = vld [vmem:[%s1187_s13 + $0x48] sm:$0xff]  ;;  %v609_v8 = vld [vmem:[%s1187_s13 + $0x10] sm:$0xff] }
  0xc0   : > { %v594_v16 = vadd.f32 0.0001, %v580_v9  ;;  %893 = vpow2.f32 %v445_v58  ;;  %675 = vst [vmem:[%s1154_s10 + $0xd0] sm:$0xff] %v601_v12  ;;  %v378_v22 = vpop.f32.mrf.mxu3  ;;  %v401_v29 = vand.u32 2147483647, %v1229_v11  ;;  %v539_v30 = vmul.f32 %v886_v56, %v538_v13 }
  0xc1   : > { %895 = vpow2.f32 %v431_v60  ;;  %649 = vst [vmem:[%s1154_s10] sm:$0xff] %v635_v18  ;;  %v629_v61 = vmul.f32 %v615_v19, %v601_v12  ;;  %v1246_v31 = vadd.f32 %v378_v22, %v1134_v34  ;;  %v476_v62 = vmul.f32 %v888_v0, %v475_v14 }
  0xc2   : > { %654 = vst [vmem:[%s1154_s10 + $0x28] sm:$0xff] %v594_v16  ;;  %v622_v28 = vmul.f32 %v608_v15, %v594_v16  ;;  %v360_v43 = vpop.f32.mrf.mxu1  ;;  %vm1251_vm5 = vcmp.lt.f32.partialorder %v477_v17, 0.0004427343  ;;  %v422_v38 = vsub.f32 0.0, %v408_v27  ;;  %v415_v45 = vsub.f32 0.0, %v401_v29 }
  0xc3   : > { %v643_v47 = vadd.f32 %v629_v61, %v1172_v63  ;;  %v1258_v48 = vadd.f32 %v360_v43, %v1134_v34  ;;  %v409_v52 = vand.u32 2147483647, %v1246_v31  ;;  %v1265_v46 = vadd.f32 %v314_v24, %v1143_v40 }
  0xc4   : > { %v890_v36 = vpop.eup %889  ;;  %v636_v39 = vadd.f32 %v622_v28, %v1160_v49  ;;  %v1268_v49 = vadd.f32 %v331_v35, %v1143_v40  ;;  %v447_v57 = vmul.f32 1.442695, %v422_v38  ;;  %v393_v2 = vmax.f32 %v1180_v23, 0.0  ;;  %v316_v23 = vpop.f32.mrf.mxu0 }
  0xc5   : > { %v892_v41 = vpop.eup %891  ;;  %v536_v42 = vmul.f32 0.6931472, %v890_v36  ;;  %673 = vst [vmem:[%s1154_s10 + $0xc0] sm:$0xff] %v643_v47  ;;  %v386_v7 = vmax.f32 %v1190_v26, 0.0  ;;  %v433_v14 = vmul.f32 1.442695, %v415_v45  ;;  %v1293_v27 = vadd.f32 %v316_v23, %v1143_v40  ;;  %v334_v28 = vpop.f32.mrf.mxu2 }
  0xc6   : > { %v894_v51 = vpop.eup %893  ;;  %v473_v44 = vmul.f32 0.6931472, %v892_v41  ;;  %652 = vst [vmem:[%s1154_s10 + $0x18] sm:$0xff] %v636_v39  ;;  %v423_v18 = vsub.f32 0.0, %v409_v52  ;;  %v402_v19 = vand.u32 2147483647, %v1258_v48 }
  0xc7   : > { %v896_v53 = vpop.eup %895  ;;  %v542_v63 = vsel %vm1236_vm4, %v539_v30, %v536_v42  ;;  %v543_v55 = vadd.f32 1.0, %v894_v51  ;;  %v546_v56 = vmul.f32 -0.5, %v894_v51  ;;  %662 = vst [vmem:[%s1154_s10 + $0x68] sm:$0xff] %v1265_v46  ;;  %v549_v6 = vand.u32 2147483647, %v894_v51 }
  0xc8   : > { %v588_v58 = vadd.f32 %v542_v63, %v392_v20  ;;  %v479_v59 = vsel %vm1251_vm5, %v476_v62, %v473_v44  ;;  %v480_v60 = vadd.f32 1.0, %v896_v53  ;;  %v483_v0 = vmul.f32 -0.5, %v896_v53  ;;  %683 = vst [vmem:[%s1154_s10 + $0x110] sm:$0xff] %v1268_v49  ;;  %v380_v9 = vpop.f32.mrf.mxu3 }
  0xc9   : > { %v581_v1 = vadd.f32 %v479_v59, %v385_v25  ;;  %897 = vlog2.f32 %v543_v55  ;;  %v547_v3 = vadd.f32 1.0, %v546_v56  ;;  %v486_v17 = vand.u32 2147483647, %v896_v53  ;;  %665 = vst [vmem:[%s1154_s10 + $0x80] sm:$0xff] %v1293_v27 }
  0xca   : > { %v602_v5 = vadd.f32 0.0001, %v588_v58  ;;  %899 = vlog2.f32 %v480_v60  ;;  %v484_v13 = vadd.f32 1.0, %v483_v0  ;;  %v363_v15 = vpop.f32.mrf.mxu1  ;;  %v1287_v26 = vadd.f32 %v380_v9, %v1134_v34 }
  0xcb   : > { %v595_v12 = vadd.f32 0.0001, %v581_v1  ;;  %901 = vpow2.f32 %v447_v57  ;;  %v548_v16 = vmul.f32 %v894_v51, %v547_v3  ;;  %v449_v22 = vmul.f32 1.442695, %v423_v18  ;;  %v610_v1 = vld [vmem:[%s1187_s13 + $0x18] sm:$0xff] }
  0xcc   : > { %678 = vst [vmem:[%s1154_s10 + $0xe8] sm:$0xff] %v602_v5  ;;  %903 = vpow2.f32 %v433_v14  ;;  %v630_v21 = vmul.f32 %v616_v4, %v602_v5  ;;  %v416_v24 = vsub.f32 0.0, %v402_v19  ;;  %v1290_v25 = vadd.f32 %v363_v15, %v1134_v34 }
  0xcd   : > { %657 = vst [vmem:[%s1154_s10 + $0x40] sm:$0xff] %v595_v12  ;;  %v623_v20 = vmul.f32 %v609_v8, %v595_v12  ;;  %vm1295_vm6 = vcmp.lt.f32.partialorder %v549_v6, 0.0004427343  ;;  %v410_v35 = vand.u32 2147483647, %v1287_v26  ;;  %v485_v37 = vmul.f32 %v896_v53, %v484_v13  ;;  %v617_v6 = vld [vmem:[%s1187_s13 + $0x50] sm:$0xff] }
  0xce   : > { %v644_v61 = vadd.f32 %v630_v21, %v1215_v54  ;;  %905 = vpow2.f32 %v449_v22  ;;  %v435_v38 = vmul.f32 1.442695, %v416_v24  ;;  %vm487_vm7 = vcmp.lt.f32.partialorder %v486_v17, 0.0004427343 }
  0xcf   : > { %v898_v29 = vpop.eup %897  ;;  %v637_v30 = vadd.f32 %v623_v20, %v1195_v33  ;;  %v424_v42 = vsub.f32 0.0, %v410_v35  ;;  %v1306_v33 = vadd.f32 %v334_v28, %v1143_v40  ;;  %v403_v51 = vand.u32 2147483647, %v1290_v25 }
  0xd0   : > { %v900_v36 = vpop.eup %899  ;;  %v545_v62 = vmul.f32 0.6931472, %v898_v29  ;;  %676 = vst [vmem:[%s1154_s10 + $0xd8] sm:$0xff] %v644_v61  ;;  %907 = vpow2.f32 %v435_v38  ;;  %v394_v56 = vmax.f32 %v1226_v10, 0.0  ;;  %v387_v57 = vmax.f32 %v1229_v11, 0.0 }
  0xd1   : > { %v902_v39 = vpop.eup %901  ;;  %v482_v41 = vmul.f32 0.6931472, %v900_v36  ;;  %655 = vst [vmem:[%s1154_s10 + $0x30] sm:$0xff] %v637_v30  ;;  %v451_v63 = vmul.f32 1.442695, %v424_v42  ;;  %v395_v4 = vmax.f32 %v1246_v31, 0.0 }
  0xd2   : > { %v551_v54 = vsel %vm1295_vm6, %v548_v16, %v545_v62  ;;  %v552_v45 = vadd.f32 1.0, %v902_v39  ;;  %v555_v47 = vmul.f32 -0.5, %v902_v39  ;;  %v904_v44 = vpop.eup %903  ;;  %686 = vst [vmem:[%s1154_s10 + $0x128] sm:$0xff] %v1306_v33  ;;  %v417_v5 = vsub.f32 0.0, %v403_v51  ;;  %v365_v15 = vpop.f32.mrf.mxu1 }
  0xd3   : > { %v589_v52 = vadd.f32 %v551_v54, %v393_v2  ;;  %v488_v53 = vsel %vm487_vm7, %v485_v37, %v482_v41  ;;  %v489_v60 = vadd.f32 1.0, %v904_v44  ;;  %v492_v0 = vmul.f32 -0.5, %v904_v44  ;;  %v319_v54 = vpop.f32.mrf.mxu0 }
  0xd4   : > { %v582_v55 = vadd.f32 %v488_v53, %v386_v7  ;;  %909 = vlog2.f32 %v552_v45  ;;  %v556_v59 = vadd.f32 1.0, %v555_v47  ;;  %v906_v2 = vpop.eup %905  ;;  %v558_v7 = vand.u32 2147483647, %v902_v39 }
  0xd5   : > { %v603_v58 = vadd.f32 0.0001, %v589_v52  ;;  %911 = vpow2.f32 %v451_v63  ;;  %v561_v10 = vadd.f32 1.0, %v906_v2  ;;  %v388_v8 = vmax.f32 %v1258_v48, 0.0 }
  0xd6   : > { %v596_v3 = vadd.f32 0.0001, %v582_v55  ;;  %913 = vlog2.f32 %v489_v60  ;;  %v495_v9 = vand.u32 2147483647, %v904_v44  ;;  %v564_v12 = vmul.f32 -0.5, %v906_v2  ;;  %v908_v23 = vpop.eup %907  ;;  %v618_v60 = vld [vmem:[%s1187_s13 + $0x58] sm:$0xff] }
  0xd7   : > { %681 = vst [vmem:[%s1154_s10 + $0x100] sm:$0xff] %v603_v58  ;;  %v437_v14 = vmul.f32 1.442695, %v417_v5  ;;  %v557_v16 = vmul.f32 %v902_v39, %v556_v59  ;;  %v493_v17 = vadd.f32 1.0, %v492_v0  ;;  %915 = vlog2.f32 %v561_v10 }
  0xd8   : > { %660 = vst [vmem:[%s1154_s10 + $0x58] sm:$0xff] %v596_v3  ;;  %v624_v13 = vmul.f32 %v610_v1, %v596_v3  ;;  %v631_v18 = vmul.f32 %v617_v6, %v603_v58  ;;  %v565_v20 = vadd.f32 1.0, %v564_v12  ;;  %v567_v21 = vand.u32 2147483647, %v906_v2 }
  0xd9   : > { %v498_v22 = vadd.f32 1.0, %v908_v23  ;;  %v501_v24 = vmul.f32 -0.5, %v908_v23  ;;  %917 = vpow2.f32 %v437_v14  ;;  %v1324_v43 = vadd.f32 %v365_v15, %v1134_v34  ;;  %v619_v14 = vld [vmem:[%s1187_s13 + $0x60] sm:$0xff] }
  0xda   : > { %v910_v19 = vpop.eup %909  ;;  %v638_v29 = vadd.f32 %v624_v13, %v1207_v50  ;;  %vm559_vm8 = vcmp.lt.f32.partialorder %v558_v7, 0.0004427343  ;;  %v645_v35 = vadd.f32 %v631_v18, %v1249_v32  ;;  %v494_v37 = vmul.f32 %v904_v44, %v493_v17  ;;  %v611_v7 = vld [vmem:[%s1187_s13 + $0x20] sm:$0xff] }
  0xdb   : > { %v554_v28 = vmul.f32 0.6931472, %v910_v19  ;;  %v912_v30 = vpop.eup %911  ;;  %919 = vlog2.f32 %v498_v22  ;;  %v502_v61 = vadd.f32 1.0, %v501_v24  ;;  %vm1327_vm9 = vcmp.lt.f32.partialorder %v495_v9, 0.0004427343  ;;  %v336_v24 = vpop.f32.mrf.mxu2 }
  0xdc   : > { %v914_v36 = vpop.eup %913  ;;  %v570_v39 = vadd.f32 1.0, %v912_v30  ;;  %658 = vst [vmem:[%s1154_s10 + $0x48] sm:$0xff] %v638_v29  ;;  %v566_v34 = vmul.f32 %v906_v2, %v565_v20  ;;  %v573_v42 = vmul.f32 -0.5, %v912_v30  ;;  %vm1333_vm10 = vcmp.lt.f32.partialorder %v567_v21, 0.0004427343  ;;  %v612_v21 = vld [vmem:[%s1187_s13 + $0x28] sm:$0xff] }
  0xdd   : > { %v560_v62 = vsel %vm559_vm8, %v557_v16, %v554_v28  ;;  %v491_v41 = vmul.f32 0.6931472, %v914_v36  ;;  %679 = vst [vmem:[%s1154_s10 + $0xf0] sm:$0xff] %v645_v35  ;;  %v916_v45 = vpop.eup %915  ;;  %v504_v47 = vand.u32 2147483647, %v908_v23  ;;  %v503_v63 = vmul.f32 %v908_v23, %v502_v61  ;;  %v620_v36 = vld [vmem:[%s1187_s13 + $0x68] sm:$0xff] }
  0xde   : > { %v590_v50 = vadd.f32 %v560_v62, %v394_v56  ;;  %921 = vlog2.f32 %v570_v39  ;;  %v404_v51 = vand.u32 2147483647, %v1324_v43  ;;  %v563_v53 = vmul.f32 0.6931472, %v916_v45 }
  0xdf   : > { %v497_v52 = vsel %vm1327_vm9, %v494_v37, %v491_v41  ;;  %v918_v55 = vpop.eup %917  ;;  %v576_v58 = vand.u32 2147483647, %v912_v30  ;;  %v1344_v0 = vadd.f32 %v319_v54, %v1143_v40  ;;  %v574_v3 = vadd.f32 1.0, %v573_v42 }
  0xe0   : > { %v604_v44 = vadd.f32 0.0001, %v590_v50  ;;  %v583_v56 = vadd.f32 %v497_v52, %v387_v57  ;;  %v418_v59 = vsub.f32 0.0, %v404_v51  ;;  %v569_v2 = vsel %vm1333_vm10, %v566_v34, %v563_v53 }
  0xe1   : > { %v920_v1 = vpop.eup %919  ;;  %v507_v5 = vadd.f32 1.0, %v918_v55  ;;  %v510_v6 = vmul.f32 -0.5, %v918_v55  ;;  %v591_v57 = vadd.f32 %v569_v2, %v395_v4  ;;  %vm505_vm11 = vcmp.lt.f32.partialorder %v504_v47, 0.0004427343  ;;  %668 = vst [vmem:[%s1154_s10 + $0x98] sm:$0xff] %v1344_v0  ;;  %v613_v47 = vld [vmem:[%s1187_s13 + $0x30] sm:$0xff] }
  0xe2   : > { %684 = vst [vmem:[%s1154_s10 + $0x118] sm:$0xff] %v604_v44  ;;  %v597_v11 = vadd.f32 0.0001, %v583_v56  ;;  %v500_v10 = vmul.f32 0.6931472, %v920_v1  ;;  %v396_v12 = vmax.f32 %v1287_v26, 0.0  ;;  %v632_v13 = vmul.f32 %v618_v60, %v604_v44 }
  0xe3   : > { %v439_v9 = vmul.f32 1.442695, %v418_v59  ;;  %923 = vlog2.f32 %v507_v5  ;;  %v605_v23 = vadd.f32 0.0001, %v591_v57  ;;  %v575_v18 = vmul.f32 %v912_v30, %v574_v3  ;;  %v614_v60 = vld [vmem:[%s1187_s13 + $0x38] sm:$0xff] }
  0xe4   : > { %v922_v15 = vpop.eup %921  ;;  %663 = vst [vmem:[%s1154_s10 + $0x70] sm:$0xff] %v597_v11  ;;  %v506_v16 = vsel %vm505_vm11, %v503_v63, %v500_v10  ;;  %v625_v17 = vmul.f32 %v611_v7, %v597_v11  ;;  %v646_v26 = vadd.f32 %v632_v13, %v1268_v49  ;;  %vm577_vm12 = vcmp.lt.f32.partialorder %v576_v58, 0.0004427343 }
  0xe5   : > { %925 = vpow2.f32 %v439_v9  ;;  %v584_v31 = vadd.f32 %v506_v16, %v388_v8  ;;  %v572_v4 = vmul.f32 0.6931472, %v922_v15  ;;  %687 = vst [vmem:[%s1154_s10 + $0x130] sm:$0xff] %v605_v23  ;;  %v511_v19 = vadd.f32 1.0, %v510_v6  ;;  %v321_v8 = vpop.f32.mrf.mxu0 }
  0xe6   : > { %v639_v20 = vadd.f32 %v625_v17, %v1265_v46  ;;  %v633_v22 = vmul.f32 %v619_v14, %v605_v23  ;;  %v513_v48 = vand.u32 2147483647, %v918_v55  ;;  %682 = vst [vmem:[%s1154_s10 + $0x108] sm:$0xff] %v646_v26  ;;  %v337_v46 = vadd.f32 %v336_v24, %v1143_v40 }
  0xe7   : > { %v598_v28 = vadd.f32 0.0001, %v584_v31  ;;  %v578_v29 = vsel %vm577_vm12, %v575_v18, %v572_v4  ;;  %v512_v39 = vmul.f32 %v918_v55, %v511_v19  ;;  %v322_v50 = vadd.f32 %v321_v8, %v1143_v40 }
  0xe8   : > { %v592_v61 = vadd.f32 %v578_v29, %v396_v12  ;;  %661 = vst [vmem:[%s1154_s10 + $0x60] sm:$0xff] %v639_v20  ;;  %v647_v49 = vadd.f32 %v633_v22, %v1306_v33  ;;  %v389_v33 = vmax.f32 %v1290_v25, 0.0  ;;  %vm514_vm13 = vcmp.lt.f32.partialorder %v513_v48, 0.0004427343 }
  0xe9   : > { %v924_v30 = vpop.eup %923  ;;  %666 = vst [vmem:[%s1154_s10 + $0x88] sm:$0xff] %v598_v28  ;;  %v626_v35 = vmul.f32 %v612_v21, %v598_v28  ;;  %v390_v56 = vmax.f32 %v1324_v43, 0.0 }
  0xea   : > { %v606_v37 = vadd.f32 0.0001, %v592_v61  ;;  %v509_v38 = vmul.f32 0.6931472, %v924_v30  ;;  %685 = vst [vmem:[%s1154_s10 + $0x120] sm:$0xff] %v647_v49 }
  0xeb   : > { %v926_v62 = vpop.eup %925  ;;  %v640_v34 = vadd.f32 %v626_v35, %v1293_v27  ;;  %689 = vst [vmem:[%s1154_s10 + $0x140] sm:$0xff] %v337_v46 }
  0xec   : > { %v516_v41 = vadd.f32 1.0, %v926_v62  ;;  %690 = vst [vmem:[%s1154_s10 + $0x148] sm:$0xff] %v606_v37  ;;  %v515_v42 = vsel %vm514_vm13, %v512_v39, %v509_v38  ;;  %v519_v54 = vmul.f32 -0.5, %v926_v62  ;;  %v634_v45 = vmul.f32 %v620_v36, %v606_v37 }
  0xed   : > { %v585_v32 = vadd.f32 %v515_v42, %v389_v33  ;;  %664 = vst [vmem:[%s1154_s10 + $0x78] sm:$0xff] %v640_v34  ;;  %v522_v27 = vand.u32 2147483647, %v926_v62 }
  0xee   : > { %927 = vlog2.f32 %v516_v41  ;;  %v648_v40 = vadd.f32 %v634_v45, %v337_v46  ;;  %671 = vst [vmem:[%s1154_s10 + $0xb0] sm:$0xff] %v322_v50  ;;  %v520_v51 = vadd.f32 1.0, %v519_v54 }
  0xef   : > { %v599_v25 = vadd.f32 0.0001, %v585_v32  ;;  %vm523_vm14 = vcmp.lt.f32.partialorder %v522_v27, 0.0004427343 }
  0xf0   : > { %688 = vst [vmem:[%s1154_s10 + $0x138] sm:$0xff] %v648_v40  ;;  %v521_v55 = vmul.f32 %v926_v62, %v520_v51 }
  0xf1   : > { %669 = vst [vmem:[%s1154_s10 + $0xa0] sm:$0xff] %v599_v25  ;;  %v627_v44 = vmul.f32 %v613_v47, %v599_v25 }
  0xf3   : > { %v641_v53 = vadd.f32 %v627_v44, %v1344_v0 }
  0xf4   : > { %v928_v52 = vpop.eup %927 }
  0xf5   : > { %v518_v63 = vmul.f32 0.6931472, %v928_v52  ;;  %667 = vst [vmem:[%s1154_s10 + $0x90] sm:$0xff] %v641_v53 }
  0xf7   : > { %v524_v58 = vsel %vm523_vm14, %v521_v55, %v518_v63 }
  0xf8   : > { %v586_v59 = vadd.f32 %v524_v58, %v390_v56 }
  0xfa   : > { %v600_v1 = vadd.f32 0.0001, %v586_v59 }
  0xfc   : > { %672 = vst [vmem:[%s1154_s10 + $0xb8] sm:$0xff] %v600_v1  ;;  %v628_v0 = vmul.f32 %v614_v60, %v600_v1 }
  0xfe   : > { %v642_v2 = vadd.f32 %v628_v0, %v322_v50 }
 0x100   : > { %670 = vst [vmem:[%s1154_s10 + $0xa8] sm:$0xff] %v642_v2 }
 0x101   : > { %956 = shalt.err (!%p953_p3)
}
 0x102   : > { %s993_s7 = smov 384   ;;  %s994_s10 = smov 24  }
 0x103   : > { %831 = dma.vmem_to_hbm [thread:$0]  (%p1058_p5), %s706_s19, 5376, %s708_s23, %s692_s27, %s993_s7, %s993_s7, %s994_s10  }
 0x104 PF: > { %p838_p4 = scmp.ge.s32.totalorder %s991_s18, 2  ;;  %s722_s12 = sand.u32 1, %s979_s15  }
 0x105   : > { %s723_s13 = scalar_lea.sflag [#allocation3], %s722_s12 }
 0x106   : > { %p834_p7 = pnand %p838_p4, %p1062_p6 }
 0x108   : > { %p835_p8 = pneg %p834_p7 }
 0x10a   : > { %974 = dma.done.wait (%p835_p8), %s723_s13, 5376  }
 0x10b   : > { %976 = vsyncadd (%p835_p8), %s723_s13, 4294961920  ;;  %p14_p9 = scmp.ge.s32.totalorder %s1045_s21, 4   ;;  %s1441_s15 = smov %s983_s16 }
 0x10c   : > { %s1442_s16 = smov %s987_s17  ;;  %s1443_s17 = smov %s1056_s24 }
 0x10d   : > { %s1444_s18 = smov %s1045_s21  ;;  %16 = sbr.rel (!%p14_p9) target bundleno = 3 (0x3), region = 74 }
 0x112   :  { %729 = vsyncpa [#allocation3], 1 }
 0x113   :  { %731 = vsyncpa [#allocation3 + $0x1], 1 }

</bundles_post_ra>
